<compile_context>
chip_gen: v7x
topology: tpu7x:2x2x1
jax: 0.10.0
libtpu: 0.0.40
codegen_flags: <defaults>
</compile_context>

<pallas_src>
import jax
import jax.numpy as jnp
from jax.experimental import pallas as pl
from jax.experimental.pallas import tpu as pltpu


def _round_up(x, m):
    return ((x + m - 1) // m) * m


def _round_down(x, m):
    return (x // m) * m


def _default_vmem_budget_bytes():
    """Bytes of VMEM to spend on the streaming double-buffers."""
    try:
        cap = int(pltpu.get_tpu_info().vmem_capacity_bytes)
    except Exception:  # non-TPU tracer / older jax: assume v7x's 64 MiB physical
        cap = 64 << 20
    # ~1/3 of physical VMEM for the pipelined blocks, capped at ~44 MiB so the
    # same sizing also fits v7x (64 MiB physical) with plenty of headroom.
    return max(16 << 20, min(cap // 3, 44 << 20))


def _choose_tiles(B, F, itemsize, budget, row_align):
    """Pick (tile_b, tile_f) so the double-buffered features block fits budget."""

    def x_bytes(tb, tf):  # features block, double-buffered by the pipeline
        return 2 * tb * tf * itemsize

    target_tb = 512  # rows; amortizes ~0.35us/step and keeps the DMA pipeline full
    if F <= 128 or x_bytes(target_tb, F) <= budget:
        tile_f = F  # single reduction block (also required when F < 128)
    else:
        tile_f = max(128, _round_down(budget // (2 * target_tb * itemsize), 128))
        tile_f = min(tile_f, _round_up(F, 128))

    tile_b = _round_down(budget // (2 * tile_f * itemsize), row_align)
    tile_b = max(row_align, min(tile_b, _round_up(B, row_align)))
    if B > row_align:
        # Keep >= 2 batch tiles so the "parallel" axis can shard across the two
        # TensorCores of a v7x megacore.
        tile_b = min(tile_b, _round_up(pl.cdiv(B, 2), row_align))
    return max(row_align, tile_b), tile_f


def _make_kernel(F, tile_f, mask_f):
    def kernel(x_ref, w_ref, b_ref, o_ref, acc_ref):
        k = pl.program_id(1)

        @pl.when(k == 0)
        def _init():
            acc_ref[...] = jnp.zeros_like(acc_ref)

        # Width-1 GEMV: VPU elementwise multiply + XLU lane reduction.
        x = x_ref[...].astype(jnp.float32)          # (tile_b, tile_f)
        w = w_ref[...].astype(jnp.float32)          # (1, tile_f), VMEM resident
        prod = x * w
        if mask_f:
            # Partial last F block: zero out-of-range columns (garbage in the
            # tail of the block must not contaminate valid rows).
            col = jax.lax.broadcasted_iota(jnp.int32, (1, tile_f), 1) + k * tile_f
            prod = jnp.where(col < F, prod, 0.0)
        acc_ref[...] += jnp.sum(prod, axis=-1, keepdims=True)  # f32 accumulate

        @pl.when(k == pl.num_programs(1) - 1)
        def _finalize():
            o_ref[...] = acc_ref[...] + b_ref[0, 0]  # scalar bias from SMEM

    return kernel


def critic_forward(features, weight, bias, *, vmem_budget_bytes=None):
    """features: (B, F); weight: (1, F) (PyTorch nn.Linear layout); bias: (1,)."""
    B, F = features.shape
    assert weight.shape == (1, F) and bias.shape == (1,)

    itemsize = jnp.dtype(features.dtype).itemsize
    row_align = 8 if itemsize >= 4 else (8 * (4 // itemsize))  # 8 f32 / 16 bf16
    if vmem_budget_bytes is None:
        vmem_budget_bytes = _default_vmem_budget_bytes()

    tile_b, tile_f = _choose_tiles(B, F, itemsize, vmem_budget_bytes, row_align)
    grid_b = pl.cdiv(B, tile_b)
    grid_f = pl.cdiv(F, tile_f)
    mask_f = (grid_f > 1) and (F % tile_f != 0)

    bias2 = bias.reshape(1, 1).astype(jnp.float32)
    w_itemsize = jnp.dtype(weight.dtype).itemsize

    # Actual per-call VMEM: double-buffered features / weight / output + scratch.
    vmem_bytes = (2 * tile_b * tile_f * itemsize
                  + 2 * tile_f * w_itemsize
                  + 2 * tile_b * 4
                  + tile_b * 4)
    vmem_limit_bytes = int(min(max(vmem_bytes + (4 << 20), 32 << 20), 56 << 20))

    kernel = _make_kernel(F, tile_f, mask_f)

    out = pl.pallas_call(
        kernel,
        out_shape=jax.ShapeDtypeStruct((B, 1), jnp.float32),
        grid=(grid_b, grid_f),
        in_specs=[
            # features: tiled over batch and reduction, double-buffered.
            pl.BlockSpec((tile_b, tile_f), lambda i, k: (i, k)),
            # weight: (1, tile_f) block; resident when grid_f == 1, tiny otherwise.
            pl.BlockSpec((1, tile_f), lambda i, k: (0, k)),
            # bias: scalar in SMEM (no VMEM tile; folds into the VPU add).
            pl.BlockSpec(memory_space=pltpu.MemorySpace.SMEM),
        ],
        out_specs=pl.BlockSpec((tile_b, 1), lambda i, k: (i, 0)),
        scratch_shapes=[pltpu.VMEM((tile_b, 1), jnp.float32)],
        compiler_params=pltpu.CompilerParams(
            # Batch tiles independent -> shard across TCs; F axis is a reduction.
            dimension_semantics=("parallel", "arbitrary"),
            vmem_limit_bytes=vmem_limit_bytes,
        ),
        cost_estimate=pl.CostEstimate(
            flops=2 * B * F,
            transcendentals=0,
            bytes_accessed=B * F * itemsize + F * w_itemsize + B * 4 + 4,
        ),
    )(features, weight, bias2)
    return out


if __name__ == "__main__":
    # NOTE: at toy sizes like (8, 32) this is pure launch overhead and XLA
    # fusion of the matvec would be faster; the kernel is written for large B/F.
    key = jax.random.PRNGKey(0)
    B, F = 8, 32  # small batch, feature_size=32

    k_x, k_w, k_b = jax.random.split(key, 3)
    # Deterministic "PyTorch-like" Linear init: U(-1/sqrt(F), 1/sqrt(F))
    bound = 1.0 / jnp.sqrt(jnp.float32(F))
    features = jax.random.normal(k_x, (B, F), dtype=jnp.float32)
    weight = jax.random.uniform(k_w, (1, F), minval=-bound, maxval=bound,
                                dtype=jnp.float32)
    bias = jax.random.uniform(k_b, (1,), minval=-bound, maxval=bound,
                              dtype=jnp.float32)

    out = jax.block_until_ready(critic_forward(features, weight, bias))
    ref = features @ weight.T + bias
    assert out.shape == (B, 1)
    assert jnp.allclose(out, ref, atol=1e-5, rtol=1e-5)

    # Partial last batch block + two batch tiles (megacore path), no host padding.
    B2 = 13
    features2 = jax.random.normal(key, (B2, F), dtype=jnp.float32)
    out2 = jax.block_until_ready(critic_forward(features2, weight, bias))
    ref2 = features2 @ weight.T + bias
    assert out2.shape == (B2, 1)
    assert jnp.allclose(out2, ref2, atol=1e-5, rtol=1e-5)

    # F-tiled reduction path (grid_f > 1, masked partial last F block): force a
    # tiny VMEM budget so tile_f = 128 < F3 = 160.
    B3, F3 = 32, 160
    k_x3, k_w3, k_b3 = jax.random.split(jax.random.PRNGKey(0), 3)
    feats3 = jax.random.normal(k_x3, (B3, F3), dtype=jnp.float32)
    w3 = jax.random.uniform(k_w3, (1, F3), minval=-0.1, maxval=0.1, dtype=jnp.float32)
    b3 = jax.random.uniform(k_b3, (1,), minval=-0.1, maxval=0.1, dtype=jnp.float32)
    out3 = jax.block_until_ready(
        critic_forward(feats3, w3, b3, vmem_budget_bytes=256 << 10))
    ref3 = feats3 @ w3.T + b3
    assert out3.shape == (B3, 1)
    assert jnp.allclose(out3, ref3, atol=1e-4, rtol=1e-4)

    # bf16 features (halves HBM traffic for this bandwidth-bound kernel);
    # in-kernel accumulation stays f32.
    B4 = 32
    feats4 = jax.random.normal(k_x, (B4, F), dtype=jnp.float32)
    out4 = jax.block_until_ready(
        critic_forward(feats4.astype(jnp.bfloat16), weight, bias))
    ref4 = feats4.astype(jnp.bfloat16).astype(jnp.float32) @ weight.T + bias
    assert out4.shape == (B4, 1)
    assert jnp.allclose(out4, ref4, atol=3e-2, rtol=3e-2)

    print("KERNEL_OK")
</pallas_src>

<mosaic_0001>
module attributes {stable_mosaic.version = 11 : i64} {
  func.func @kernel(%arg0: i32, %arg1: i32, %arg2: memref<8x32xf32, #tpu.memory_space<vmem>>, %arg3: memref<1x32xf32, #tpu.memory_space<vmem>>, %arg4: memref<1x1xf32, #tpu.memory_space<smem>>, %arg5: memref<8x1xf32, #tpu.memory_space<vmem>>, %arg6: memref<8x1xf32, #tpu.memory_space<vmem>>) attributes {dimension_semantics = [#tpu.dimension_semantics<parallel>, #tpu.dimension_semantics<arbitrary>], iteration_bounds = array<i64: 1, 1>, scalar_prefetch = 0 : i64, scratch_operands = 1 : i64, tpu.core_type = #tpu.core_type<tc>, window_params = [{transform_indices = @transform_0, window_bounds = array<i64: 8, 32>}, {transform_indices = @transform_1, window_bounds = array<i64: 1, 32>}, {transform_indices = @transform_2, window_bounds = array<i64: 1, 1>}, {transform_indices = @transform_3, window_bounds = array<i64: 8, 1>}]} {
    %c0_i32 = arith.constant 0 : i32
    %0 = arith.cmpi eq, %arg1, %c0_i32 : i32
    %1 = arith.extui %0 : i1 to i32
    %c0_i32_0 = arith.constant 0 : i32
    %2 = arith.cmpi ne, %1, %c0_i32_0 : i32
    scf.if %2 {
      %cst_10 = arith.constant 0.000000e+00 : f32
      %15 = vector.broadcast %cst_10 : f32 to vector<8x1xf32>
      %c0_11 = arith.constant 0 : index
      %c0_12 = arith.constant 0 : index
      %16 = vector.load %arg6[%c0_11, %c0_12] : memref<8x1xf32, #tpu.memory_space<vmem>>, vector<8x1xf32>
      tpu.vector_store %arg6[%c0_11, %c0_12], %15 {strides = array<i32>} : memref<8x1xf32, #tpu.memory_space<vmem>>, vector<8x1xf32>,
    } else {
    }
    %c0 = arith.constant 0 : index
    %c0_1 = arith.constant 0 : index
    %3 = vector.load %arg2[%c0, %c0_1] : memref<8x32xf32, #tpu.memory_space<vmem>>, vector<8x32xf32>
    %c0_2 = arith.constant 0 : index
    %c0_3 = arith.constant 0 : index
    %4 = vector.load %arg3[%c0_2, %c0_3] : memref<1x32xf32, #tpu.memory_space<vmem>>, vector<1x32xf32>
    %5 = vector.broadcast %4 : vector<1x32xf32> to vector<8x32xf32>
    %6 = arith.mulf %3, %5 : vector<8x32xf32>
    %c0_4 = arith.constant 0 : index
    %c0_5 = arith.constant 0 : index
    %7 = vector.load %arg6[%c0_4, %c0_5] : memref<8x1xf32, #tpu.memory_space<vmem>>, vector<8x1xf32>
    %cst = arith.constant dense<0.000000e+00> : vector<8xf32>
    %8 = vector.multi_reduction <add>, %6, %cst [1] : vector<8x32xf32> to vector<8xf32>
    %9 = vector.shape_cast %8 : vector<8xf32> to vector<8x1xf32>
    %10 = arith.addf %7, %9 : vector<8x1xf32>
    %c0_6 = arith.constant 0 : index
    %c0_7 = arith.constant 0 : index
    %11 = vector.load %arg6[%c0_6, %c0_7] : memref<8x1xf32, #tpu.memory_space<vmem>>, vector<8x1xf32>
    tpu.vector_store %arg6[%c0_6, %c0_7], %10 {strides = array<i32>} : memref<8x1xf32, #tpu.memory_space<vmem>>, vector<8x1xf32>,
    %c0_i32_8 = arith.constant 0 : i32
    %12 = arith.cmpi eq, %arg1, %c0_i32_8 : i32
    %13 = arith.extui %12 : i1 to i32
    %c0_i32_9 = arith.constant 0 : i32
    %14 = arith.cmpi ne, %13, %c0_i32_9 : i32
    scf.if %14 {
      %c0_10 = arith.constant 0 : index
      %c0_11 = arith.constant 0 : index
      %15 = vector.load %arg6[%c0_10, %c0_11] : memref<8x1xf32, #tpu.memory_space<vmem>>, vector<8x1xf32>
      %c0_12 = arith.constant 0 : index
      %c0_13 = arith.constant 0 : index
      %16 = memref.load %arg4[%c0_12, %c0_13] : memref<1x1xf32, #tpu.memory_space<smem>>
      %17 = vector.broadcast %16 : f32 to vector<8x1xf32>
      %18 = arith.addf %15, %17 : vector<8x1xf32>
      %c0_14 = arith.constant 0 : index
      %c0_15 = arith.constant 0 : index
      %19 = vector.load %arg5[%c0_14, %c0_15] : memref<8x1xf32, #tpu.memory_space<vmem>>, vector<8x1xf32>
      tpu.vector_store %arg5[%c0_14, %c0_15], %18 {strides = array<i32>} : memref<8x1xf32, #tpu.memory_space<vmem>>, vector<8x1xf32>,
    } else {
    }
    return
  }
  func.func @transform_0(%arg0: i32, %arg1: i32) -> (i32, i32) {
    %c0_i32 = arith.constant 0 : i32
    return %arg0, %arg1 : i32, i32
  }
  func.func @transform_1(%arg0: i32, %arg1: i32) -> (i32, i32) {
    %c0_i32 = arith.constant 0 : i32
    %c0_i32_0 = arith.constant 0 : i32
    return %c0_i32, %arg1 : i32, i32
  }
  func.func @transform_2(%arg0: i32, %arg1: i32) -> (i32, i32) {
    %c0_i32 = arith.constant 0 : i32
    %c0_i32_0 = arith.constant 0 : i32
    %c0_i32_1 = arith.constant 0 : i32
    return %c0_i32, %c0_i32_0 : i32, i32
  }
  func.func @transform_3(%arg0: i32, %arg1: i32) -> (i32, i32) {
    %c0_i32 = arith.constant 0 : i32
    %c0_i32_0 = arith.constant 0 : i32
    return %arg0, %c0_i32 : i32, i32
  }
}

</mosaic_0001>

<bundles_post_ra>
// kernel: tpu_custom_call.1
= control target key start
LH: loop header
LB: loop body
LE: loop exit
PB: predicated region body
PF: predicated region fallthrough
CT: control target
= control target key end

     0   :  { %9 = vsyncpa [#allocation5], 0  ;;  %s90_s12 = smov [#allocation4]   ;;  %s136_s0 = inlined_call_operand.hbm [shape: f32[8,32], index: 0, kind: input, shape index: {}]   ;;  %s137_s1 = inlined_call_operand.vmem [shape: f32[1,32], index: 1, kind: input, shape index: {}]   ;;  %s138_s2 = inlined_call_operand.<no memory space> [shape: f32[1,1], index: 2, kind: input, shape index: {}]   ;;  %s139_s3 = inlined_call_operand.vmem [shape: f32[8,1], index: 3, kind: output, shape index: {}]  }
   0x1   :  { %s16_s13 = sshll.u32 %s90_s12, 4  ;;  %s66_s16 = scalar_lea.hbm %s136_s0, 128  ;;  %s17_s13 = int_to_ptr.vmem [resolvable:$true] %s16_s13 }
   0x2   :  { %p67_p0 = scmp.ne.s32.totalorder %s136_s0, %s66_s16  ;;  %p70_p1 = scmp.lt.u32.totalorder %s66_s16, %s136_s0 }
   0x4   :  { %p72_p2 = pnand %p70_p1, %p67_p0 }
   0x6   :  { %75 = shalt.err (!%p72_p2)
}
   0x7   :  { %s76_s21 = scalar_lea.vmem %s17_s13, 128  ;;  %p81_p4 = scmp.lt.s32.totalorder %s17_s13, %s17_s13 }
   0x8   :  { %p77_p3 = scmp.ne.s32.totalorder %s17_s13, %s76_s21  ;;  %p82_p5 = scmp.lt.s32.totalorder %s76_s21, %s76_s21 }
   0xa   :  { %p83_p6 = por %p82_p5, %p81_p4 }
   0xc   :  { %p84_p7 = pnand %p83_p6, %p77_p3 }
   0xe   :  { %87 = shalt.err (!%p84_p7)
}
   0xf   :  { %19 = dma.hbm_to_vmem [thread:$0]  %s136_s0, 128, %s17_s13, [#allocation5]  }
  0x10   :  { %88 = dma.done.wait [#allocation5], 128  }
  0x11   :  { %89 = vsyncadd [#allocation5], 4294967168  ;;  %vm31_vm0 = vcmask 7168   ;;  %v91_v0 = vmov 0.0   ;;  %v33_v1 = vld [vmem:[#allocation4] sm:$0xff]  ;;  %vm43_vm1 = vcmask 261120   ;;  %v55_v8 = vstv %s138_s2 }
  0x12   :  { %32 = vst.msk [vmem:[#allocation2] sm:$0xff] %vm31_vm0, %v91_v0  ;;  %v63_v2 = vld [vmem:[%s137_s1] ss:$0 sm:$0xff] }
  0x13   :  { %v41_v3 = vmul.f32 %v63_v2, %v33_v1 }
  0x15   :  { %v44_v4 = vsel %vm43_vm1, %v41_v3, 0.0 }
  0x16   :  { %45 = vadd.xlane.f32.xlu0 %v44_v4 }
  0x19   :  { %v42_v5 = vld [vmem:[#allocation2] sm:$0xff] }
  0xa3   :  { %v46_v6 = vpop.xlane.xlu0 %45 }
  0xa4   :  { %v47_v7 = vadd.f32 %v46_v6, %v42_v5 }
  0xa6   :  { %49 = vst.msk [vmem:[#allocation2] sm:$0xff] %vm31_vm0, %v47_v7 }
  0xad   :  { %v53_v9 = vld [vmem:[#allocation2] sm:$0xff] }
  0xae   :  { %v56_v10 = vadd.f32 %v55_v8, %v53_v9 }
  0xb0   :  { %57 = vst.msk [vmem:[%s139_s3] sm:$0xff] %vm31_vm0, %v56_v10 }
  0xb1   :  { %62 = vsyncpa [#allocation5], 1 }

</bundles_post_ra>
